<compile_context>
chip_gen: v6e
topology: v6e:2x2x1
jax: 0.10.0
libtpu: 0.0.40
codegen_flags: <defaults>
</compile_context>

<pallas_src>
import functools

import jax
import jax.numpy as jnp
from jax import lax
from jax.experimental import pallas as pl
from jax.experimental.pallas import tpu as pltpu

DROPOUT_P = 0.02


def _attn_kernel(q_ref, k_ref, v_ref, scale_ref, bits_ref, o_ref, *,
                 keep_threshold, keep_scale):
    # (TB, S, D) blocks; bf16 at the MXU boundary, f32 accumulation.
    q = q_ref[...].astype(jnp.bfloat16)
    k = k_ref[...].astype(jnp.bfloat16)

    # qk = query @ key^T  -> (TB, S, S); contract last dims directly (no XLU transpose)
    qk = lax.dot_general(
        q, k,
        dimension_numbers=(((2,), (2,)), ((0,), (0,))),
        preferred_element_type=jnp.float32)

    # elementwise scale by the (S, S) scale_factor (broadcast over batch)
    scaled = qk * scale_ref[...]

    # numerically stable softmax over last dim (f32 on the VPU/EUP)
    m = jnp.max(scaled, axis=-1, keepdims=True)
    e = jnp.exp(scaled - m)
    l = jnp.sum(e, axis=-1, keepdims=True)
    p = e * (1.0 / l)                      # reciprocal on (TB,S,1), multiply on (TB,S,S)

    # dropout: zero w.p. p, scale kept by 1/(1-p); threshold raw uint32 bits.
    # TODO(synk): torch's exact dropout RNG stream is not reproducible; uses
    # jax.random-generated uint32 bits thresholded here.
    keep = bits_ref[...] >= jnp.uint32(keep_threshold)
    p_drop = jnp.where(keep, p * keep_scale, 0.0).astype(jnp.bfloat16)

    # output = dropout_qk @ value -> (TB, S, D)
    out = lax.dot_general(
        p_drop, v_ref[...].astype(jnp.bfloat16),
        dimension_numbers=(((2,), (1,)), ((0,), (0,))),
        preferred_element_type=jnp.float32)
    # TODO(synk): D=32 output stores are lane-masked; for large B a lane-dense
    # (S, TB*D) output slab + wrapper reshape would speed up writeback.
    o_ref[...] = out.astype(o_ref.dtype)


def attention(query, key, value, scale_factor, dropout_p, rng_key):
    B, S, D = query.shape
    assert key.shape == (B, S, D) and value.shape == (B, S, D)
    assert scale_factor.shape == (S, S)

    # batches per grid step (amortize ~0.35us per-step overhead)
    TB = min(B, 8)
    while B % TB != 0:
        TB -= 1
    grid = (B // TB,)

    # dropout randomness generated outside the kernel (portable across
    # compiled-TPU and interpret modes), thresholded inside the kernel.
    dropout_bits = jax.random.bits(rng_key, (B, S, S), dtype=jnp.uint32)
    keep_threshold = min(int(round(float(dropout_p) * (2 ** 32))), 2 ** 32 - 1)
    keep_scale = 1.0 / (1.0 - float(dropout_p)) if dropout_p > 0.0 else 1.0

    kernel = functools.partial(
        _attn_kernel, keep_threshold=keep_threshold, keep_scale=keep_scale)

    cost = pl.CostEstimate(
        flops=4 * B * S * S * D,
        transcendentals=B * S * S,
        bytes_accessed=4 * (3 * B * S * D + S * S + B * S * S + B * S * D),
    )

    # TODO(synk): for large S (>~1K) the materialized (S,S) softmax blows VMEM
    # on v7x; switch to flash-style KV tiling (online softmax) in that regime.
    return pl.pallas_call(
        kernel,
        out_shape=jax.ShapeDtypeStruct((B, S, D), query.dtype),
        grid=grid,
        in_specs=[
            pl.BlockSpec((TB, S, D), lambda b: (b, 0, 0)),   # query
            pl.BlockSpec((TB, S, D), lambda b: (b, 0, 0)),   # key
            pl.BlockSpec((TB, S, D), lambda b: (b, 0, 0)),   # value
            pl.BlockSpec((S, S), lambda b: (0, 0)),          # scale_factor
            pl.BlockSpec((TB, S, S), lambda b: (b, 0, 0)),   # dropout bits
        ],
        out_specs=pl.BlockSpec((TB, S, D), lambda b: (b, 0, 0)),
        compiler_params=pltpu.CompilerParams(
            dimension_semantics=("parallel",),   # grid steps are independent
        ),
        cost_estimate=cost,
    )(query, key, value, scale_factor, dropout_bits)


def _reference(query, key, value, scale_factor):
    qk = jnp.einsum('bqd,bkd->bqk', query, key)
    scaled = qk * scale_factor
    p = jax.nn.softmax(scaled, axis=-1)
    return jnp.einsum('bqk,bkd->bqd', p, value)


if __name__ == "__main__":
    B, S, D = 2, 128, 32

    key0 = jax.random.PRNGKey(0)
    kq, kk, kv, ks, kd = jax.random.split(key0, 5)
    query = jax.random.normal(kq, (B, S, D), dtype=jnp.float32)
    key_t = jax.random.normal(kk, (B, S, D), dtype=jnp.float32)
    value = jax.random.normal(kv, (B, S, D), dtype=jnp.float32)

    # non-trivial scale_factor (module-level torch.zeros(256,256) sized to S,
    # but randomized here so the QK^T/scale path is actually exercised)
    scale_factor = jax.random.uniform(
        ks, (S, S), dtype=jnp.float32, minval=0.0, maxval=0.25)

    # 1) dropout_p = 0: compare against pure-JAX reference (bf16 MXU tolerance)
    out0 = attention(query, key_t, value, scale_factor, 0.0, kd)
    jax.block_until_ready(out0)
    ref0 = _reference(query, key_t, value, scale_factor)
    assert out0.shape == (B, S, D)
    assert jnp.allclose(out0, ref0, atol=2e-2, rtol=2e-2)

    # 2) dropout_p = 0.02: shape / finiteness check
    out = attention(query, key_t, value, scale_factor, DROPOUT_P, kd)
    jax.block_until_ready(out)
    assert out.shape == (B, S, D)
    assert jnp.all(jnp.isfinite(out))

    print("KERNEL_OK")
</pallas_src>

<mosaic_0001>
module attributes {stable_mosaic.version = 11 : i64} {
  func.func @_attn_kernel(%arg0: i32, %arg1: memref<2x128x32xf32, #tpu.memory_space<vmem>>, %arg2: memref<2x128x32xf32, #tpu.memory_space<vmem>>, %arg3: memref<2x128x32xf32, #tpu.memory_space<vmem>>, %arg4: memref<128x128xf32, #tpu.memory_space<vmem>>, %arg5: memref<2x128x128xi32, #tpu.memory_space<vmem>>, %arg6: memref<2x128x32xf32, #tpu.memory_space<vmem>>) attributes {dimension_semantics = [#tpu.dimension_semantics<parallel>], iteration_bounds = array<i64: 1>, scalar_prefetch = 0 : i64, scratch_operands = 0 : i64, tpu.core_type = #tpu.core_type<tc>, window_params = [{transform_indices = @transform_0, window_bounds = array<i64: 2, 128, 32>}, {transform_indices = @transform_1, window_bounds = array<i64: 2, 128, 32>}, {transform_indices = @transform_2, window_bounds = array<i64: 2, 128, 32>}, {pipeline_mode = #tpu.pipeline_mode<synchronous>, transform_indices = @transform_3, window_bounds = array<i64: 128, 128>}, {transform_indices = @transform_4, window_bounds = array<i64: 2, 128, 128>}, {transform_indices = @transform_5, window_bounds = array<i64: 2, 128, 32>}]} {
    %c0 = arith.constant 0 : index
    %c0_0 = arith.constant 0 : index
    %c0_1 = arith.constant 0 : index
    %0 = vector.load %arg1[%c0, %c0_0, %c0_1] : memref<2x128x32xf32, #tpu.memory_space<vmem>>, vector<2x128x32xf32>
    %1 = arith.truncf %0 : vector<2x128x32xf32> to vector<2x128x32xbf16>
    %c0_2 = arith.constant 0 : index
    %c0_3 = arith.constant 0 : index
    %c0_4 = arith.constant 0 : index
    %2 = vector.load %arg2[%c0_2, %c0_3, %c0_4] : memref<2x128x32xf32, #tpu.memory_space<vmem>>, vector<2x128x32xf32>
    %3 = arith.truncf %2 : vector<2x128x32xf32> to vector<2x128x32xbf16>
    %cst = arith.constant dense<0.000000e+00> : vector<2x128x128xf32>
    %4 = tpu.matmul %1, %3, %cst {dimension_numbers = #tpu.dot_dimension_numbers<[2], [2], [1], [1], [0, 0, 0, 1, 1, 1], [0], [0]>} : vector<2x128x32xbf16>, vector<2x128x32xbf16>, vector<2x128x128xf32> -> vector<2x128x128xf32>
    %c0_5 = arith.constant 0 : index
    %c0_6 = arith.constant 0 : index
    %5 = vector.load %arg4[%c0_5, %c0_6] : memref<128x128xf32, #tpu.memory_space<vmem>>, vector<128x128xf32>
    %6 = vector.shape_cast %5 : vector<128x128xf32> to vector<1x128x128xf32>
    %7 = vector.broadcast %6 : vector<1x128x128xf32> to vector<2x128x128xf32>
    %8 = arith.mulf %4, %7 : vector<2x128x128xf32>
    %cst_7 = arith.constant dense<0xFF800000> : vector<2x128xf32>
    %9 = vector.multi_reduction <maximumf>, %8, %cst_7 [2] : vector<2x128x128xf32> to vector<2x128xf32>
    %10 = vector.shape_cast %9 : vector<2x128xf32> to vector<2x128x1xf32>
    %11 = vector.broadcast %10 : vector<2x128x1xf32> to vector<2x128x128xf32>
    %12 = arith.subf %8, %11 : vector<2x128x128xf32>
    %13 = math.exp %12 : vector<2x128x128xf32>
    %cst_8 = arith.constant dense<0.000000e+00> : vector<2x128xf32>
    %14 = vector.multi_reduction <add>, %13, %cst_8 [2] : vector<2x128x128xf32> to vector<2x128xf32>
    %15 = vector.shape_cast %14 : vector<2x128xf32> to vector<2x128x1xf32>
    %cst_9 = arith.constant 1.000000e+00 : f32
    %16 = vector.broadcast %cst_9 : f32 to vector<2x128x1xf32>
    %17 = arith.divf %16, %15 : vector<2x128x1xf32>
    %18 = vector.broadcast %17 : vector<2x128x1xf32> to vector<2x128x128xf32>
    %19 = arith.mulf %13, %18 : vector<2x128x128xf32>
    %c0_10 = arith.constant 0 : index
    %c0_11 = arith.constant 0 : index
    %c0_12 = arith.constant 0 : index
    %20 = vector.load %arg5[%c0_10, %c0_11, %c0_12] : memref<2x128x128xi32, #tpu.memory_space<vmem>>, vector<2x128x128xi32>
    %c0_i32 = arith.constant 0 : i32
    %21 = vector.broadcast %c0_i32 : i32 to vector<2x128x128xi32>
    %22 = arith.cmpi uge, %20, %21 : vector<2x128x128xi32>
    %cst_13 = arith.constant 1.000000e+00 : f32
    %23 = vector.broadcast %cst_13 : f32 to vector<2x128x128xf32>
    %24 = arith.mulf %19, %23 : vector<2x128x128xf32>
    %cst_14 = arith.constant 0.000000e+00 : f32
    %25 = vector.broadcast %cst_14 : f32 to vector<2x128x128xf32>
    %26 = arith.select %22, %24, %25 : vector<2x128x128xi1>, vector<2x128x128xf32>
    %27 = arith.truncf %26 : vector<2x128x128xf32> to vector<2x128x128xbf16>
    %c0_15 = arith.constant 0 : index
    %c0_16 = arith.constant 0 : index
    %c0_17 = arith.constant 0 : index
    %28 = vector.load %arg3[%c0_15, %c0_16, %c0_17] : memref<2x128x32xf32, #tpu.memory_space<vmem>>, vector<2x128x32xf32>
    %29 = arith.truncf %28 : vector<2x128x32xf32> to vector<2x128x32xbf16>
    %cst_18 = arith.constant dense<0.000000e+00> : vector<2x128x32xf32>
    %30 = tpu.matmul %27, %29, %cst_18 {dimension_numbers = #tpu.dot_dimension_numbers<[2], [1], [1], [2], [0, 0, 0, 1, 1, 2], [0], [0]>} : vector<2x128x128xbf16>, vector<2x128x32xbf16>, vector<2x128x32xf32> -> vector<2x128x32xf32>
    %c0_19 = arith.constant 0 : index
    %c0_20 = arith.constant 0 : index
    %c0_21 = arith.constant 0 : index
    %31 = vector.load %arg6[%c0_19, %c0_20, %c0_21] : memref<2x128x32xf32, #tpu.memory_space<vmem>>, vector<2x128x32xf32>
    tpu.vector_store %arg6[%c0_19, %c0_20, %c0_21], %30 {strides = array<i32>} : memref<2x128x32xf32, #tpu.memory_space<vmem>>, vector<2x128x32xf32>,
    return
  }
  func.func @transform_0(%arg0: i32) -> (i32, i32, i32) {
    %c0_i32 = arith.constant 0 : i32
    %c0_i32_0 = arith.constant 0 : i32
    %c0_i32_1 = arith.constant 0 : i32
    return %arg0, %c0_i32, %c0_i32_0 : i32, i32, i32
  }
  func.func @transform_1(%arg0: i32) -> (i32, i32, i32) {
    %c0_i32 = arith.constant 0 : i32
    %c0_i32_0 = arith.constant 0 : i32
    %c0_i32_1 = arith.constant 0 : i32
    return %arg0, %c0_i32, %c0_i32_0 : i32, i32, i32
  }
  func.func @transform_2(%arg0: i32) -> (i32, i32, i32) {
    %c0_i32 = arith.constant 0 : i32
    %c0_i32_0 = arith.constant 0 : i32
    %c0_i32_1 = arith.constant 0 : i32
    return %arg0, %c0_i32, %c0_i32_0 : i32, i32, i32
  }
  func.func @transform_3(%arg0: i32) -> (i32, i32) {
    %c0_i32 = arith.constant 0 : i32
    %c0_i32_0 = arith.constant 0 : i32
    %c0_i32_1 = arith.constant 0 : i32
    return %c0_i32, %c0_i32_0 : i32, i32
  }
  func.func @transform_4(%arg0: i32) -> (i32, i32, i32) {
    %c0_i32 = arith.constant 0 : i32
    %c0_i32_0 = arith.constant 0 : i32
    %c0_i32_1 = arith.constant 0 : i32
    return %arg0, %c0_i32, %c0_i32_0 : i32, i32, i32
  }
  func.func @transform_5(%arg0: i32) -> (i32, i32, i32) {
    %c0_i32 = arith.constant 0 : i32
    %c0_i32_0 = arith.constant 0 : i32
    %c0_i32_1 = arith.constant 0 : i32
    return %arg0, %c0_i32, %c0_i32_0 : i32, i32, i32
  }
}

</mosaic_0001>

<bundles_post_ra>
// kernel: tpu_custom_call.1
= control target key start
LH: loop header
LB: loop body
LE: loop exit
PB: predicated region body
PF: predicated region fallthrough
CT: control target
= control target key end

     0   :  { %vm117_vm0 = vcmask 261120   ;;  %s2483_s1 = inlined_call_operand.vmem [shape: f32[2,128,32], index: 1, kind: input, shape index: {}]   ;;  %s2484_s0 = inlined_call_operand.vmem [shape: f32[2,128,32], index: 0, kind: input, shape index: {}]   ;;  %s2485_s3 = inlined_call_operand.vmem [shape: f32[128,128], index: 3, kind: input, shape index: {}]   ;;  %s2486_s2 = inlined_call_operand.vmem [shape: f32[2,128,32], index: 2, kind: input, shape index: {}]   ;;  %s2487_s4 = inlined_call_operand.vmem [shape: u32[2,128,128], index: 4, kind: input, shape index: {}]   ;;  %s2488_s5 = inlined_call_operand.vmem [shape: f32[2,128,32], index: 5, kind: output, shape index: {}]  }
   0x1   :  { %v83_v0 = vld [vmem:[%s2483_s1 + $0x70] sm:$0xff]  ;;  %v84_v1 = vld [vmem:[%s2483_s1 + $0x78] sm:$0xff]  ;;  %v81_v5 = vld [vmem:[%s2483_s1 + $0x60] sm:$0xff] }
   0x2   :  { %v99_v2 = vld [vmem:[%s2483_s1 + $0xf0] sm:$0xff]  ;;  %v108_v3 = vpack.c.bf16 %v84_v1, %v83_v0  ;;  %v100_v4 = vld [vmem:[%s2483_s1 + $0xf8] sm:$0xff]  ;;  %v82_v6 = vld [vmem:[%s2483_s1 + $0x68] sm:$0xff] }
   0x3   :  { %v116_v7 = vpack.c.bf16 %v100_v4, %v99_v2  ;;  %v107_v8 = vpack.c.bf16 %v82_v6, %v81_v5  ;;  %v97_v9 = vld [vmem:[%s2483_s1 + $0xe0] sm:$0xff]  ;;  %v98_v10 = vld [vmem:[%s2483_s1 + $0xe8] sm:$0xff]  ;;  %v79_v14 = vld [vmem:[%s2483_s1 + $0x50] sm:$0xff] }
   0x4   :  { %1422 = vmatprep.subr.msk.bf16.mxu0 %vm117_vm0, %v108_v3  ;;  %v164_v11 = vsel %vm117_vm0, %v108_v3, 0  ;;  %v115_v12 = vpack.c.bf16 %v98_v10, %v97_v9  ;;  %v80_v15 = vld [vmem:[%s2483_s1 + $0x58] sm:$0xff]  ;;  %v95_v16 = vld [vmem:[%s2483_s1 + $0xd0] sm:$0xff]  ;;  %v21_v22 = vld [vmem:[%s2484_s0] sm:$0xff] }
   0x5   :  { %1430 = vmatprep.subr.msk.bf16.mxu1 %vm117_vm0, %v116_v7  ;;  %1295 = vmatpush3.bf16.xpose.msra.mxu0 %v164_v11  ;;  %v309_v13 = vsel %vm117_vm0, %v116_v7, 0  ;;  %v96_v17 = vld [vmem:[%s2483_s1 + $0xd8] sm:$0xff]  ;;  %v161_v18 = vsel %vm117_vm0, %v107_v8, 0  ;;  %v106_v19 = vpack.c.bf16 %v80_v15, %v79_v14  ;;  %v22_v23 = vld [vmem:[%s2484_s0 + $0x8] sm:$0xff]  ;;  %v37_v24 = vld [vmem:[%s2484_s0 + $0x80] sm:$0xff] }
   0x6   :  { %1327 = vmatpush3.bf16.xpose.msra.mxu1 %v309_v13  ;;  %1423 = vmatprep.subr.msk.bf16.mxu0 %vm117_vm0, %v107_v8  ;;  %v306_v20 = vsel %vm117_vm0, %v115_v12, 0  ;;  %v114_v21 = vpack.c.bf16 %v96_v17, %v95_v16  ;;  %v38_v25 = vld [vmem:[%s2484_s0 + $0x88] sm:$0xff]  ;;  %v53_v26 = vpack.c.bf16 %v22_v23, %v21_v22  ;;  %v77_v28 = vld [vmem:[%s2483_s1 + $0x40] sm:$0xff]  ;;  %v75_v36 = vld [vmem:[%s2483_s1 + $0x30] sm:$0xff] }
   0x7   :  { %1431 = vmatprep.subr.msk.bf16.mxu1 %vm117_vm0, %v115_v12  ;;  %v61_v27 = vpack.c.bf16 %v38_v25, %v37_v24  ;;  %v78_v29 = vld [vmem:[%s2483_s1 + $0x48] sm:$0xff]  ;;  %v93_v30 = vld [vmem:[%s2483_s1 + $0xc0] sm:$0xff]  ;;  %v158_v32 = vsel %vm117_vm0, %v106_v19, 0  ;;  %v76_v37 = vld [vmem:[%s2483_s1 + $0x38] sm:$0xff] }
   0x8   :  { %1310 = vmatprep.mubr.msk.bf16.mxu0 %vm117_vm0, %v53_v26  ;;  %v94_v31 = vld [vmem:[%s2483_s1 + $0xc8] sm:$0xff]  ;;  %v105_v33 = vpack.c.bf16 %v78_v29, %v77_v28  ;;  %v303_v34 = vsel %vm117_vm0, %v114_v21, 0  ;;  %v91_v38 = vld [vmem:[%s2483_s1 + $0xb0] sm:$0xff]  ;;  %v92_v39 = vld [vmem:[%s2483_s1 + $0xb8] sm:$0xff]  ;;  %v104_v41 = vpack.c.bf16 %v76_v37, %v75_v36 }
   0x9   :  { %1342 = vmatprep.mubr.msk.bf16.mxu1 %vm117_vm0, %v61_v27  ;;  %v113_v35 = vpack.c.bf16 %v94_v31, %v93_v30  ;;  %v112_v43 = vpack.c.bf16 %v92_v39, %v91_v38  ;;  %v73_v44 = vld [vmem:[%s2483_s1 + $0x20] sm:$0xff]  ;;  %v74_v45 = vld [vmem:[%s2483_s1 + $0x28] sm:$0xff]  ;;  %v71_v52 = vld [vmem:[%s2483_s1 + $0x10] sm:$0xff] }
   0xa   :  { %v155_v40 = vsel %vm117_vm0, %v105_v33, 0  ;;  %v89_v46 = vld [vmem:[%s2483_s1 + $0xa0] sm:$0xff]  ;;  %v90_v47 = vld [vmem:[%s2483_s1 + $0xa8] sm:$0xff]  ;;  %v152_v48 = vsel %vm117_vm0, %v104_v41, 0  ;;  %v103_v49 = vpack.c.bf16 %v74_v45, %v73_v44  ;;  %v72_v53 = vld [vmem:[%s2483_s1 + $0x18] sm:$0xff] }
   0xb   :  { %v300_v42 = vsel %vm117_vm0, %v113_v35, 0  ;;  %v297_v50 = vsel %vm117_vm0, %v112_v43, 0  ;;  %v111_v51 = vpack.c.bf16 %v90_v47, %v89_v46  ;;  %v87_v54 = vld [vmem:[%s2483_s1 + $0x90] sm:$0xff]  ;;  %v88_v55 = vld [vmem:[%s2483_s1 + $0x98] sm:$0xff]  ;;  %v102_v57 = vpack.c.bf16 %v72_v53, %v71_v52  ;;  %v69_v60 = vld [vmem:[%s2483_s1] sm:$0xff] }
   0xc   :  { %v149_v56 = vsel %vm117_vm0, %v103_v49, 0  ;;  %v110_v59 = vpack.c.bf16 %v88_v55, %v87_v54  ;;  %v70_v61 = vld [vmem:[%s2483_s1 + $0x8] sm:$0xff]  ;;  %v85_v62 = vld [vmem:[%s2483_s1 + $0x80] sm:$0xff]  ;;  %v23_v6 = vld [vmem:[%s2484_s0 + $0x10] sm:$0xff] }
   0xd   :  { %1297 = vmatpush3.bf16.xpose.msra.mxu0 %v161_v18  ;;  %v294_v58 = vsel %vm117_vm0, %v111_v51, 0  ;;  %v86_v63 = vld [vmem:[%s2483_s1 + $0x88] sm:$0xff]  ;;  %v146_v0 = vsel %vm117_vm0, %v102_v57, 0  ;;  %v101_v1 = vpack.c.bf16 %v70_v61, %v69_v60  ;;  %v24_v7 = vld [vmem:[%s2484_s0 + $0x18] sm:$0xff]  ;;  %v39_v8 = vld [vmem:[%s2484_s0 + $0x90] sm:$0xff] }
   0xe   :  { %1329 = vmatpush3.bf16.xpose.msra.mxu1 %v306_v20  ;;  %1424 = vmatprep.subr.msk.bf16.mxu0 %vm117_vm0, %v106_v19  ;;  %v291_v2 = vsel %vm117_vm0, %v110_v59, 0  ;;  %v109_v3 = vpack.c.bf16 %v86_v63, %v85_v62  ;;  %v40_v9 = vld [vmem:[%s2484_s0 + $0x98] sm:$0xff]  ;;  %v25_v10 = vld [vmem:[%s2484_s0 + $0x20] sm:$0xff]  ;;  %v26_v11 = vld [vmem:[%s2484_s0 + $0x28] sm:$0xff]  ;;  %v54_v14 = vpack.c.bf16 %v24_v7, %v23_v6 }
   0xf   :  { %1432 = vmatprep.subr.msk.bf16.mxu1 %vm117_vm0, %v114_v21  ;;  %v143_v4 = vsel %vm117_vm0, %v101_v1, 0  ;;  %v41_v12 = vld [vmem:[%s2484_s0 + $0xa0] sm:$0xff]  ;;  %v42_v13 = vld [vmem:[%s2484_s0 + $0xa8] sm:$0xff]  ;;  %v62_v15 = vpack.c.bf16 %v40_v9, %v39_v8  ;;  %v55_v16 = vpack.c.bf16 %v26_v11, %v25_v10  ;;  %v27_v18 = vld [vmem:[%s2484_s0 + $0x30] sm:$0xff] }
  0x10   :  { %v288_v5 = vsel %vm117_vm0, %v109_v3, 0  ;;  %v63_v17 = vpack.c.bf16 %v42_v13, %v41_v12  ;;  %v28_v19 = vld [vmem:[%s2484_s0 + $0x38] sm:$0xff]  ;;  %v43_v20 = vld [vmem:[%s2484_s0 + $0xb0] sm:$0xff]  ;;  %v29_v22 = vld [vmem:[%s2484_s0 + $0x40] sm:$0xff] }
  0x11   :  { %v44_v21 = vld [vmem:[%s2484_s0 + $0xb8] sm:$0xff]  ;;  %v30_v23 = vld [vmem:[%s2484_s0 + $0x48] sm:$0xff]  ;;  %v45_v24 = vld [vmem:[%s2484_s0 + $0xc0] sm:$0xff]  ;;  %v56_v26 = vpack.c.bf16 %v28_v19, %v27_v18 }
  0x12   :  { %v46_v25 = vld [vmem:[%s2484_s0 + $0xc8] sm:$0xff]  ;;  %v64_v27 = vpack.c.bf16 %v44_v21, %v43_v20  ;;  %v57_v28 = vpack.c.bf16 %v30_v23, %v29_v22  ;;  %v31_v30 = vld [vmem:[%s2484_s0 + $0x50] sm:$0xff]  ;;  %v32_v31 = vld [vmem:[%s2484_s0 + $0x58] sm:$0xff] }
  0x13   :  { %v65_v29 = vpack.c.bf16 %v46_v25, %v45_v24  ;;  %v49_v36 = vld [vmem:[%s2484_s0 + $0xe0] sm:$0xff]  ;;  %v50_v37 = vld [vmem:[%s2484_s0 + $0xe8] sm:$0xff]  ;;  %v58_v38 = vpack.c.bf16 %v32_v31, %v31_v30  ;;  %v51_v44 = vld [vmem:[%s2484_s0 + $0xf0] sm:$0xff] }
  0x14   :  { %v52_v45 = vld [vmem:[%s2484_s0 + $0xf8] sm:$0xff]  ;;  %v408_v52 = vld [vmem:[%s2485_s3] sm:$0xff]  ;;  %v413_v19 = vld [vmem:[%s2485_s3 + $0x28] sm:$0xff] }
  0x15   :  { %1299 = vmatpush3.bf16.xpose.msra.mxu0 %v158_v32  ;;  %v47_v32 = vld [vmem:[%s2484_s0 + $0xd0] sm:$0xff]  ;;  %v68_v47 = vpack.c.bf16 %v52_v45, %v51_v44  ;;  %v415_v8 = vld [vmem:[%s2485_s3 + $0x38] sm:$0xff] }
  0x16   :  { %1331 = vmatpush3.bf16.xpose.msra.mxu1 %v303_v34  ;;  %1425 = vmatprep.subr.msk.bf16.mxu0 %vm117_vm0, %v105_v33  ;;  %v48_v33 = vld [vmem:[%s2484_s0 + $0xd8] sm:$0xff]  ;;  %v33_v34 = vld [vmem:[%s2484_s0 + $0x60] sm:$0xff]  ;;  %v418_v23 = vld [vmem:[%s2485_s3 + $0x50] sm:$0xff] }
  0x17   :  { %1433 = vmatprep.subr.msk.bf16.mxu1 %vm117_vm0, %v113_v35  ;;  %v34_v35 = vld [vmem:[%s2484_s0 + $0x68] sm:$0xff]  ;;  %v66_v39 = vpack.c.bf16 %v48_v33, %v47_v32 }
  0x1d   :  { %1301 = vmatpush3.bf16.xpose.msra.mxu0 %v155_v40  ;;  %v59_v40 = vpack.c.bf16 %v34_v35, %v33_v34  ;;  %v416_v35 = vld [vmem:[%s2485_s3 + $0x40] sm:$0xff] }
  0x1e   :  { %1333 = vmatpush3.bf16.xpose.msra.mxu1 %v300_v42  ;;  %1426 = vmatprep.subr.msk.bf16.mxu0 %vm117_vm0, %v104_v41  ;;  %v67_v41 = vpack.c.bf16 %v50_v37, %v49_v36  ;;  %v35_v42 = vld [vmem:[%s2484_s0 + $0x70] sm:$0xff] }
  0x1f   :  { %1434 = vmatprep.subr.msk.bf16.mxu1 %vm117_vm0, %v112_v43  ;;  %v36_v43 = vld [vmem:[%s2484_s0 + $0x78] sm:$0xff] }
  0x20   :  { %v60_v46 = vpack.c.bf16 %v36_v43, %v35_v42  ;;  %v422_v43 = vld [vmem:[%s2485_s3 + $0x70] sm:$0xff] }
  0x25   :  { %1303 = vmatpush3.bf16.xpose.msra.mxu0 %v152_v48  ;;  %v410_v48 = vld [vmem:[%s2485_s3 + $0x10] sm:$0xff] }
  0x26   :  { %1335 = vmatpush3.bf16.xpose.msra.mxu1 %v297_v50  ;;  %1427 = vmatprep.subr.msk.bf16.mxu0 %vm117_vm0, %v103_v49 }
  0x27   :  { %1435 = vmatprep.subr.msk.bf16.mxu1 %vm117_vm0, %v111_v51 }
  0x2d   :  { %1305 = vmatpush3.bf16.xpose.msra.mxu0 %v149_v56 }
  0x2e   :  { %1337 = vmatpush3.bf16.xpose.msra.mxu1 %v294_v58  ;;  %1428 = vmatprep.subr.msk.bf16.mxu0 %vm117_vm0, %v102_v57  ;;  %v411_v58 = vld [vmem:[%s2485_s3 + $0x18] sm:$0xff] }
  0x2f   :  { %1436 = vmatprep.subr.msk.bf16.mxu1 %vm117_vm0, %v110_v59 }
  0x35   :  { %1307 = vmatpush3.bf16.xpose.msra.mxu0 %v146_v0  ;;  %v409_v0 = vld [vmem:[%s2485_s3 + $0x8] sm:$0xff] }
  0x36   :  { %1339 = vmatpush3.bf16.xpose.msra.mxu1 %v291_v2  ;;  %1429 = vmatprep.subr.msk.bf16.mxu0 %vm117_vm0, %v101_v1 }
  0x37   :  { %1437 = vmatprep.subr.msk.bf16.mxu1 %vm117_vm0, %v109_v3  ;;  %v414_v3 = vld [vmem:[%s2485_s3 + $0x30] sm:$0xff] }
  0x3d   :  { %1309 = vmatpush3.bf16.xpose.msra.mxu0 %v143_v4 }
  0x3e   :  { %1341 = vmatpush3.bf16.xpose.msra.mxu1 %v288_v5 }
  0x44   :  { %1311 = vmatmul.mubr.msk.bf16.vlgmr.msra.gmra.mxu0 %vm117_vm0, %v54_v14 }
  0x45   :  { %1343 = vmatmul.mubr.msk.bf16.vlgmr.msra.gmra.mxu1 %vm117_vm0, %v62_v15  ;;  %1314 = vmatprep.mubr.msk.bf16.mxu0 %vm117_vm0, %v55_v16  ;;  %v412_v15 = vld [vmem:[%s2485_s3 + $0x20] sm:$0xff] }
  0x46   :  { %1346 = vmatprep.mubr.msk.bf16.mxu1 %vm117_vm0, %v63_v17 }
  0x4c   :  { %1315 = vmatmul.mubr.msk.bf16.gmra.mxu0 %vm117_vm0, %v56_v26 }
  0x4d   :  { %1347 = vmatmul.mubr.msk.bf16.gmra.mxu1 %vm117_vm0, %v64_v27  ;;  %1318 = vmatprep.mubr.msk.bf16.mxu0 %vm117_vm0, %v57_v28  ;;  %v419_v28 = vld [vmem:[%s2485_s3 + $0x58] sm:$0xff] }
  0x4e   :  { %1350 = vmatprep.mubr.msk.bf16.mxu1 %vm117_vm0, %v65_v29 }
  0x54   :  { %1319 = vmatmul.mubr.msk.bf16.gmra.mxu0 %vm117_vm0, %v58_v38 }
  0x55   :  { %1351 = vmatmul.mubr.msk.bf16.gmra.mxu1 %vm117_vm0, %v66_v39  ;;  %1322 = vmatprep.mubr.msk.bf16.mxu0 %vm117_vm0, %v59_v40  ;;  %v417_v39 = vld [vmem:[%s2485_s3 + $0x48] sm:$0xff] }
  0x56   :  { %1354 = vmatprep.mubr.msk.bf16.mxu1 %vm117_vm0, %v67_v41 }
  0x5c   :  { %1323 = vmatmul.mubr.msk.bf16.gmra.mxu0 %vm117_vm0, %v60_v46 }
  0x5d   :  { %1355 = vmatmul.mubr.msk.bf16.gmra.mxu1 %vm117_vm0, %v68_v47 }
 0x104   :  { %v1312_v49 = vpop.f32.mrf.mxu0 }
 0x105   :  { %v1839_v50 = vmul.f32 %v1312_v49, %v410_v48  ;;  %v1344_v51 = vpop.f32.mrf.mxu1 }
 0x106   :  { %v200_v53 = vpop.f32.mrf.mxu0  ;;  %v1847_v57 = vmul.f32 %v1344_v51, %v410_v48  ;;  %v423_v48 = vld [vmem:[%s2485_s3 + $0x78] sm:$0xff] }
 0x107   :  { %v345_v54 = vpop.f32.mrf.mxu1  ;;  %460 = vmax.xlane.f32.xlu0 %v1839_v50  ;;  %v1856_v62 = vmul.f32 %v408_v52, %v200_v53  ;;  %v420_v53 = vld [vmem:[%s2485_s3 + $0x60] sm:$0xff] }
 0x108   :  { %v1845_v55 = vmul.f32 %v408_v52, %v345_v54  ;;  %v1313_v56 = vpop.f32.mrf.mxu0 }
 0x109   :  { %v1345_v59 = vpop.f32.mrf.mxu1  ;;  %v1854_v61 = vmul.f32 %v1313_v56, %v411_v58 }
 0x10a   :  { %488 = vmax.xlane.f32.xlu1 %v1845_v55  ;;  %v203_v60 = vpop.f32.mrf.mxu0  ;;  %v1863_v2 = vmul.f32 %v1345_v59, %v411_v58  ;;  %v421_v59 = vld [vmem:[%s2485_s3 + $0x68] sm:$0xff] }
 0x10b   :  { %492 = vmax.xlane.f32.xlu0 %v1847_v57  ;;  %v348_v1 = vpop.f32.mrf.mxu1  ;;  %v1868_v4 = vmul.f32 %v409_v0, %v203_v60 }
 0x10c   :  { %v1316_v63 = vpop.f32.mrf.mxu0  ;;  %v1877_v9 = vmul.f32 %v409_v0, %v348_v1 }
 0x10d   :  { %v1348_v6 = vpop.f32.mrf.mxu1  ;;  %v1871_v7 = vmul.f32 %v1316_v63, %v414_v3 }
 0x10e   :  { %462 = vmax.xlane.f32.xlu1 %v1854_v61  ;;  %v216_v5 = vpop.f32.mrf.mxu0  ;;  %v1882_v13 = vmul.f32 %v1348_v6, %v414_v3 }
 0x10f   :  { %456 = vmax.xlane.f32.xlu0 %v1856_v62  ;;  %v361_v11 = vpop.f32.mrf.mxu1  ;;  %v1892_v18 = vmul.f32 %v412_v15, %v216_v5 }
 0x110   :  { %v1317_v10 = vpop.f32.mrf.mxu0  ;;  %v1904_v24 = vmul.f32 %v412_v15, %v361_v11 }
 0x111   :  { %v1879_v12 = vmul.f32 %v1317_v10, %v415_v8  ;;  %v1349_v14 = vpop.f32.mrf.mxu1 }
 0x112   :  { %494 = vmax.xlane.f32.xlu1 %v1863_v2  ;;  %v1888_v16 = vmul.f32 %v1349_v14, %v415_v8  ;;  %v219_v17 = vpop.f32.mrf.mxu0 }
 0x113   :  { %458 = vmax.xlane.f32.xlu0 %v1868_v4  ;;  %v364_v21 = vpop.f32.mrf.mxu1  ;;  %v1899_v22 = vmul.f32 %v413_v19, %v219_v17 }
 0x114   :  { %v1320_v20 = vpop.f32.mrf.mxu0  ;;  %v1913_v29 = vmul.f32 %v413_v19, %v364_v21 }
 0x115   :  { %v1352_v26 = vpop.f32.mrf.mxu1  ;;  %v1907_v27 = vmul.f32 %v1320_v20, %v418_v23 }
 0x116   :  { %490 = vmax.xlane.f32.xlu1 %v1877_v9  ;;  %v232_v25 = vpop.f32.mrf.mxu0  ;;  %v1918_v33 = vmul.f32 %v1352_v26, %v418_v23 }
 0x117   :  { %468 = vmax.xlane.f32.xlu0 %v1871_v7  ;;  %v377_v31 = vpop.f32.mrf.mxu1  ;;  %v1928_v38 = vmul.f32 %v416_v35, %v232_v25 }
 0x118   :  { %v1321_v30 = vpop.f32.mrf.mxu0  ;;  %v1940_v44 = vmul.f32 %v416_v35, %v377_v31 }
 0x119   :  { %v1915_v32 = vmul.f32 %v1321_v30, %v419_v28  ;;  %v1353_v34 = vpop.f32.mrf.mxu1 }
 0x11a   :  { %470 = vmax.xlane.f32.xlu1 %v1879_v12  ;;  %v1924_v36 = vmul.f32 %v1353_v34, %v419_v28  ;;  %v235_v37 = vpop.f32.mrf.mxu0 }
 0x11b   :  { %500 = vmax.xlane.f32.xlu0 %v1882_v13  ;;  %v380_v41 = vpop.f32.mrf.mxu1  ;;  %v1935_v42 = vmul.f32 %v417_v39, %v235_v37 }
 0x11c   :  { %v1324_v40 = vpop.f32.mrf.mxu0  ;;  %v1949_v49 = vmul.f32 %v417_v39, %v380_v41 }
 0x11d   :  { %v1356_v46 = vpop.f32.mrf.mxu1  ;;  %v1943_v47 = vmul.f32 %v1324_v40, %v422_v43 }
 0x11e   :  { %502 = vmax.xlane.f32.xlu1 %v1888_v16  ;;  %v248_v45 = vpop.f32.mrf.mxu0  ;;  %v1973_v5 = vmul.f32 %v1356_v46, %v422_v43 }
 0x11f   :  { %464 = vmax.xlane.f32.xlu0 %v1892_v18  ;;  %v393_v52 = vpop.f32.mrf.mxu1  ;;  %v1958_v56 = vmul.f32 %v420_v53, %v248_v45 }
 0x120   :  { %v1325_v51 = vpop.f32.mrf.mxu0  ;;  %v1964_v63 = vmul.f32 %v420_v53, %v393_v52 }
 0x121   :  { %v1954_v54 = vmul.f32 %v1325_v51, %v423_v48  ;;  %v1357_v60 = vpop.f32.mrf.mxu1 }
 0x122   :  { %466 = vmax.xlane.f32.xlu1 %v1899_v22  ;;  %v251_v58 = vpop.f32.mrf.mxu0  ;;  %v1977_v6 = vmul.f32 %v1357_v60, %v423_v48 }
 0x123   :  { %496 = vmax.xlane.f32.xlu0 %v1904_v24  ;;  %v1967_v0 = vmul.f32 %v421_v59, %v251_v58  ;;  %v396_v1 = vpop.f32.mrf.mxu1 }
 0x124   :  { %v1971_v3 = vmul.f32 %v421_v59, %v396_v1 }
 0x126   :  { %498 = vmax.xlane.f32.xlu1 %v1913_v29 }
 0x127   :  { %476 = vmax.xlane.f32.xlu0 %v1907_v27 }
 0x12a   :  { %478 = vmax.xlane.f32.xlu1 %v1915_v32 }
 0x12b   :  { %508 = vmax.xlane.f32.xlu0 %v1918_v33 }
 0x12e   :  { %510 = vmax.xlane.f32.xlu1 %v1924_v36 }
 0x12f   :  { %472 = vmax.xlane.f32.xlu0 %v1928_v38 }
 0x132   :  { %474 = vmax.xlane.f32.xlu1 %v1935_v42 }
 0x133   :  { %504 = vmax.xlane.f32.xlu0 %v1940_v44 }
 0x136   :  { %506 = vmax.xlane.f32.xlu1 %v1949_v49 }
 0x137   :  { %484 = vmax.xlane.f32.xlu0 %v1943_v47 }
 0x13a   :  { %486 = vmax.xlane.f32.xlu1 %v1954_v54 }
 0x13b   :  { %480 = vmax.xlane.f32.xlu0 %v1958_v56 }
 0x13e   :  { %482 = vmax.xlane.f32.xlu1 %v1967_v0 }
 0x13f   :  { %512 = vmax.xlane.f32.xlu0 %v1964_v63 }
 0x142   :  { %514 = vmax.xlane.f32.xlu1 %v1971_v3 }
 0x143   :  { %516 = vmax.xlane.f32.xlu0 %v1973_v5 }
 0x146   :  { %518 = vmax.xlane.f32.xlu1 %v1977_v6 }
 0x190   :  { %v461_v8 = vpop.xlane.xlu0 %460 }
 0x191   :  { %v522_v10 = vsub.f32 %v1839_v50, %v461_v8 }
 0x193   :  { %v556_v11 = vmul.f32 1.442695, %v522_v10  ;;  %v489_v14 = vpop.xlane.xlu1 %488 }
 0x194   :  { %v493_v15 = vpop.xlane.xlu0 %492  ;;  %v536_v25 = vsub.f32 %v1845_v55, %v489_v14 }
 0x195   :  { %1438 = vpow2.f32 %v556_v11  ;;  %v538_v17 = vsub.f32 %v1847_v57, %v493_v15 }
 0x196   :  { %v584_v35 = vmul.f32 1.442695, %v536_v25 }
 0x197   :  { %v588_v19 = vmul.f32 1.442695, %v538_v17  ;;  %v463_v20 = vpop.xlane.xlu1 %462 }
 0x198   :  { %v523_v21 = vsub.f32 %v1854_v61, %v463_v20  ;;  %v457_v23 = vpop.xlane.xlu0 %456 }
 0x199   :  { %1440 = vpow2.f32 %v588_v19  ;;  %v520_v26 = vsub.f32 %v1856_v62, %v457_v23 }
 0x19a   :  { %v558_v28 = vmul.f32 1.442695, %v523_v21 }
 0x19b   :  { %v552_v30 = vmul.f32 1.442695, %v520_v26  ;;  %v495_v31 = vpop.xlane.xlu1 %494  ;;  %v901_v26 = vld [vmem:[%s2486_s2 + $0x68] sm:$0xff] }
 0x19c   :  { %1442 = vpow2.f32 %v558_v28  ;;  %v539_v50 = vsub.f32 %v1863_v2, %v495_v31  ;;  %v459_v34 = vpop.xlane.xlu0 %458  ;;  %v918_v28 = vld [vmem:[%s2486_s2 + $0xf0] sm:$0xff] }
 0x19d   :  { %1444 = vpow2.f32 %v552_v30  ;;  %v521_v57 = vsub.f32 %v1868_v4, %v459_v34 }
 0x19e   :  { %v590_v37 = vmul.f32 1.442695, %v539_v50  ;;  %v919_v50 = vld [vmem:[%s2486_s2 + $0xf8] sm:$0xff] }
 0x19f   :  { %v491_v39 = vpop.xlane.xlu1 %490  ;;  %v554_v61 = vmul.f32 1.442695, %v521_v57 }
 0x1a0   :  { %1446 = vpow2.f32 %v590_v37  ;;  %v537_v55 = vsub.f32 %v1877_v9, %v491_v39  ;;  %v469_v40 = vpop.xlane.xlu0 %468 }
 0x1a1   :  { %1448 = vpow2.f32 %v584_v35  ;;  %v526_v62 = vsub.f32 %v1871_v7, %v469_v40  ;;  %v935_v35 = vpack.c.bf16 %v919_v50, %v918_v28  ;;  %v899_v40 = vld [vmem:[%s2486_s2 + $0x58] sm:$0xff] }
 0x1a2   :  { %v1989_v41 = vpop.eup %1438  ;;  %1450 = vpow2.f32 %v554_v61  ;;  %v586_v2 = vmul.f32 1.442695, %v537_v55  ;;  %v898_v55 = vld [vmem:[%s2486_s2 + $0x50] sm:$0xff] }
 0x1a3   :  { %v564_v43 = vmul.f32 1.442695, %v526_v62  ;;  %v471_v45 = vpop.xlane.xlu1 %470  ;;  %620 = vadd.xlane.f32.xlu0 %v1989_v41  ;;  %1390 = vmatprep.subr.bf16.mxu1 %v935_v35  ;;  %v916_v62 = vld [vmem:[%s2486_s2 + $0xe0] sm:$0xff] }
 0x1a4   :  { %v527_v4 = vsub.f32 %v1879_v12, %v471_v45  ;;  %v501_v46 = vpop.xlane.xlu0 %500  ;;  %1391 = vmatpush3.bf16.msra.mxu1 %v935_v35  ;;  %v925_v45 = vpack.c.bf16 %v899_v40, %v898_v55  ;;  %v911_v55 = vld [vmem:[%s2486_s2 + $0xb8] sm:$0xff] }
 0x1a5   :  { %1452 = vpow2.f32 %v564_v43  ;;  %v542_v48 = vsub.f32 %v1882_v13, %v501_v46 }
 0x1a6   :  { %v1994_v51 = vpop.eup %1440  ;;  %1454 = vpow2.f32 %v586_v2  ;;  %v566_v7 = vmul.f32 1.442695, %v527_v4  ;;  %v917_v2 = vld [vmem:[%s2486_s2 + $0xe8] sm:$0xff] }
 0x1a7   :  { %v596_v9 = vmul.f32 1.442695, %v542_v48  ;;  %v503_v52 = vpop.xlane.xlu1 %502  ;;  %652 = vadd.xlane.f32.xlu0 %v1994_v51  ;;  %v934_v46 = vpack.c.bf16 %v917_v2, %v916_v62 }
 0x1a8   :  { %v543_v53 = vsub.f32 %v1888_v16, %v503_v52  ;;  %v465_v58 = vpop.xlane.xlu0 %464  ;;  %v902_v16 = vld [vmem:[%s2486_s2 + $0x70] sm:$0xff] }
 0x1a9   :  { %v1998_v59 = vpop.eup %1442  ;;  %1456 = vpow2.f32 %v596_v9  ;;  %v524_v12 = vsub.f32 %v1892_v18, %v465_v58  ;;  %v903_v18 = vld [vmem:[%s2486_s2 + $0x78] sm:$0xff]  ;;  %1392 = vmatprep.subr.bf16.mxu1 %v934_v46  ;;  %v897_v58 = vld [vmem:[%s2486_s2 + $0x48] sm:$0xff] }
 0x1aa   :  { %v2001_v60 = vpop.eup %1444  ;;  %622 = vadd.xlane.f32.xlu1 %v1998_v59  ;;  %1458 = vpow2.f32 %v566_v7  ;;  %v598_v8 = vmul.f32 1.442695, %v543_v53  ;;  %v927_v17 = vpack.c.bf16 %v903_v18, %v902_v16  ;;  %v896_v53 = vld [vmem:[%s2486_s2 + $0x40] sm:$0xff]  ;;  %1393 = vmatpush3.bf16.msra.mxu1 %v934_v46 }
 0x1ab   :  { %v560_v13 = vmul.f32 1.442695, %v524_v12  ;;  %v467_v1 = vpop.xlane.xlu1 %466  ;;  %616 = vadd.xlane.f32.xlu0 %v2001_v60  ;;  %v914_v12 = vld [vmem:[%s2486_s2 + $0xd0] sm:$0xff] }
 0x1ac   :  { %v525_v10 = vsub.f32 %v1899_v22, %v467_v1  ;;  %v497_v11 = vpop.xlane.xlu0 %496  ;;  %1358 = vmatprep.subr.bf16.mxu0 %v927_v17  ;;  %v924_v1 = vpack.c.bf16 %v897_v58, %v896_v53  ;;  %v909_v53 = vld [vmem:[%s2486_s2 + $0xa8] sm:$0xff] }
 0x1ad   :  { %v2012_v14 = vpop.eup %1446  ;;  %1460 = vpow2.f32 %v560_v13  ;;  %v540_v15 = vsub.f32 %v1904_v24, %v497_v11  ;;  %1359 = vmatpush3.bf16.msra.mxu0 %v927_v17  ;;  %v900_v24 = vld [vmem:[%s2486_s2 + $0x60] sm:$0xff] }
 0x1ae   :  { %v2015_v19 = vpop.eup %1448  ;;  %654 = vadd.xlane.f32.xlu1 %v2012_v14  ;;  %1462 = vpow2.f32 %v598_v8  ;;  %v562_v21 = vmul.f32 1.442695, %v525_v10  ;;  %v915_v8 = vld [vmem:[%s2486_s2 + $0xd8] sm:$0xff] }
 0x1af   :  { %v592_v22 = vmul.f32 1.442695, %v540_v15  ;;  %v499_v20 = vpop.xlane.xlu1 %498  ;;  %648 = vadd.xlane.f32.xlu0 %v2015_v19  ;;  %v2029_v30 = vpop.eup %1450  ;;  %v933_v11 = vpack.c.bf16 %v915_v8, %v914_v12 }
 0x1b0   :  { %v541_v23 = vsub.f32 %v1913_v29, %v499_v20  ;;  %v477_v25 = vpop.xlane.xlu0 %476  ;;  %v926_v29 = vpack.c.bf16 %v901_v26, %v900_v24  ;;  %v895_v20 = vld [vmem:[%s2486_s2 + $0x38] sm:$0xff]  ;;  %v913_v24 = vld [vmem:[%s2486_s2 + $0xc8] sm:$0xff] }
 0x1b1   :  { %1464 = vpow2.f32 %v592_v22  ;;  %v530_v31 = vsub.f32 %v1907_v27, %v477_v25  ;;  %1394 = vmatprep.subr.bf16.mxu1 %v933_v11  ;;  %v894_v22 = vld [vmem:[%s2486_s2 + $0x30] sm:$0xff] }
 0x1b2   :  { %v2035_v34 = vpop.eup %1452  ;;  %618 = vadd.xlane.f32.xlu1 %v2029_v30  ;;  %1360 = vmatprep.subr.bf16.mxu0 %v926_v29  ;;  %1466 = vpow2.f32 %v562_v21  ;;  %v594_v39 = vmul.f32 1.442695, %v541_v23  ;;  %v912_v21 = vld [vmem:[%s2486_s2 + $0xc0] sm:$0xff]  ;;  %v923_v25 = vpack.c.bf16 %v895_v20, %v894_v22  ;;  %v907_v22 = vld [vmem:[%s2486_s2 + $0x98] sm:$0xff] }
 0x1b3   :  { %v572_v57 = vmul.f32 1.442695, %v530_v31  ;;  %v479_v37 = vpop.xlane.xlu1 %478  ;;  %628 = vadd.xlane.f32.xlu0 %v2035_v34  ;;  %1361 = vmatpush3.bf16.msra.mxu0 %v926_v29  ;;  %v2049_v43 = vpop.eup %1454  ;;  %v932_v28 = vpack.c.bf16 %v913_v24, %v912_v21 }
 0x1b4   :  { %v531_v61 = vsub.f32 %v1915_v32, %v479_v37  ;;  %v509_v27 = vpop.xlane.xlu0 %508  ;;  %1362 = vmatprep.subr.bf16.mxu0 %v925_v45  ;;  %1395 = vmatpush3.bf16.msra.mxu1 %v933_v11  ;;  %v893_v37 = vld [vmem:[%s2486_s2 + $0x28] sm:$0xff] }
 0x1b5   :  { %1468 = vpow2.f32 %v572_v57  ;;  %v546_v32 = vsub.f32 %v1918_v33, %v509_v27  ;;  %1396 = vmatprep.subr.bf16.mxu1 %v932_v28  ;;  %v892_v57 = vld [vmem:[%s2486_s2 + $0x20] sm:$0xff] }
 0x1b6   :  { %v2055_v4 = vpop.eup %1456  ;;  %650 = vadd.xlane.f32.xlu1 %v2049_v43  ;;  %1470 = vpow2.f32 %v594_v39  ;;  %v574_v52 = vmul.f32 1.442695, %v531_v61  ;;  %v910_v39 = vld [vmem:[%s2486_s2 + $0xb0] sm:$0xff]  ;;  %v922_v27 = vpack.c.bf16 %v893_v37, %v892_v57 }
 0x1b7   :  { %v604_v48 = vmul.f32 1.442695, %v546_v32  ;;  %v511_v9 = vpop.xlane.xlu1 %510  ;;  %660 = vadd.xlane.f32.xlu0 %v2055_v4  ;;  %1363 = vmatpush3.bf16.msra.mxu0 %v925_v45  ;;  %v2069_v13 = vpop.eup %1458  ;;  %v931_v62 = vpack.c.bf16 %v911_v55, %v910_v39 }
 0x1b8   :  { %v547_v33 = vsub.f32 %v1924_v36, %v511_v9  ;;  %v473_v7 = vpop.xlane.xlu0 %472  ;;  %1364 = vmatprep.subr.bf16.mxu0 %v924_v1  ;;  %1397 = vmatpush3.bf16.msra.mxu1 %v932_v28  ;;  %v891_v9 = vld [vmem:[%s2486_s2 + $0x18] sm:$0xff] }
 0x1b9   :  { %1472 = vpow2.f32 %v604_v48  ;;  %v528_v36 = vsub.f32 %v1928_v38, %v473_v7  ;;  %1398 = vmatprep.subr.bf16.mxu1 %v931_v62  ;;  %v890_v48 = vld [vmem:[%s2486_s2 + $0x10] sm:$0xff] }
 0x1ba   :  { %v2075_v10 = vpop.eup %1460  ;;  %630 = vadd.xlane.f32.xlu1 %v2069_v13  ;;  %1474 = vpow2.f32 %v574_v52  ;;  %v606_v15 = vmul.f32 1.442695, %v547_v33  ;;  %v908_v52 = vld [vmem:[%s2486_s2 + $0xa0] sm:$0xff]  ;;  %v921_v7 = vpack.c.bf16 %v891_v9, %v890_v48 }
 0x1bb   :  { %v568_v16 = vmul.f32 1.442695, %v528_v36  ;;  %v475_v18 = vpop.xlane.xlu1 %474  ;;  %624 = vadd.xlane.f32.xlu0 %v2075_v10  ;;  %1365 = vmatpush3.bf16.msra.mxu0 %v924_v1  ;;  %v2089_v23 = vpop.eup %1462  ;;  %v930_v12 = vpack.c.bf16 %v909_v53, %v908_v52 }
 0x1bc   :  { %v529_v38 = vsub.f32 %v1935_v42, %v475_v18  ;;  %v505_v17 = vpop.xlane.xlu0 %504  ;;  %1366 = vmatprep.subr.bf16.mxu0 %v923_v25  ;;  %1399 = vmatpush3.bf16.msra.mxu1 %v931_v62  ;;  %v889_v18 = vld [vmem:[%s2486_s2 + $0x8] sm:$0xff] }
 0x1bd   :  { %1476 = vpow2.f32 %v568_v16  ;;  %v544_v42 = vsub.f32 %v1940_v44, %v505_v17  ;;  %1400 = vmatprep.subr.bf16.mxu1 %v930_v12  ;;  %v888_v16 = vld [vmem:[%s2486_s2] sm:$0xff] }
 0x1be   :  { %v2095_v26 = vpop.eup %1464  ;;  %662 = vadd.xlane.f32.xlu1 %v2089_v23  ;;  %1478 = vpow2.f32 %v606_v15  ;;  %v570_v50 = vmul.f32 1.442695, %v529_v38  ;;  %v906_v15 = vld [vmem:[%s2486_s2 + $0x90] sm:$0xff]  ;;  %v920_v17 = vpack.c.bf16 %v889_v18, %v888_v16  ;;  %v776_v18 = vld [vmem:[%s2487_s4] sm:$0xff] }
 0x1bf   :  { %v600_v31 = vmul.f32 1.442695, %v544_v42  ;;  %v507_v29 = vpop.xlane.xlu1 %506  ;;  %656 = vadd.xlane.f32.xlu0 %v2095_v26  ;;  %1367 = vmatpush3.bf16.msra.mxu0 %v923_v25  ;;  %v2109_v61 = vpop.eup %1466  ;;  %v929_v21 = vpack.c.bf16 %v907_v22, %v906_v15  ;;  %v777_v15 = vld [vmem:[%s2487_s4 + $0x8] sm:$0xff]  ;;  %v779_v22 = vld [vmem:[%s2487_s4 + $0x18] sm:$0xff]  ;;  %vm808_vm1 = vcmp.ge.u32.totalorder %v776_v18, 0 }
 0x1c0   :  { %v545_v44 = vsub.f32 %v1949_v49, %v507_v29  ;;  %v485_v35 = vpop.xlane.xlu0 %484  ;;  %1368 = vmatprep.subr.bf16.mxu0 %v922_v27  ;;  %1401 = vmatpush3.bf16.msra.mxu1 %v930_v12  ;;  %vm809_vm2 = vcmp.ge.u32.totalorder %v777_v15, 0  ;;  %vm811_vm4 = vcmp.ge.u32.totalorder %v779_v22, 0  ;;  %v783_v18 = vld [vmem:[%s2487_s4 + $0x38] sm:$0xff] }
 0x1c1   :  { %1480 = vpow2.f32 %v600_v31  ;;  %v534_v49 = vsub.f32 %v1943_v47, %v485_v35  ;;  %1402 = vmatprep.subr.bf16.mxu1 %v929_v21  ;;  %v904_v31 = vld [vmem:[%s2486_s2 + $0x80] sm:$0xff]  ;;  %vm1182_vm5 = vmpackc.low %vm809_vm2, %vm808_vm1  ;;  %vm815_vm1 = vcmp.ge.u32.totalorder %v783_v18, 0  ;;  %v803_v18 = vld [vmem:[%s2487_s4 + $0xd8] sm:$0xff] }
 0x1c2   :  { %v2115_v40 = vpop.eup %1468  ;;  %626 = vadd.xlane.f32.xlu1 %v2109_v61  ;;  %1482 = vpow2.f32 %v570_v50  ;;  %v602_v2 = vmul.f32 1.442695, %v545_v44  ;;  %v905_v44 = vld [vmem:[%s2486_s2 + $0x88] sm:$0xff] }
 0x1c3   :  { %v580_v32 = vmul.f32 1.442695, %v534_v49  ;;  %v487_v45 = vpop.xlane.xlu1 %486  ;;  %636 = vadd.xlane.f32.xlu0 %v2115_v40  ;;  %1369 = vmatpush3.bf16.msra.mxu0 %v922_v27  ;;  %v2129_v33 = vpop.eup %1470 }
 0x1c4   :  { %v535_v47 = vsub.f32 %v1954_v54, %v487_v45  ;;  %v481_v46 = vpop.xlane.xlu0 %480  ;;  %1370 = vmatprep.subr.bf16.mxu0 %v921_v7  ;;  %1403 = vmatpush3.bf16.msra.mxu1 %v929_v21 }
 0x1c5   :  { %1484 = vpow2.f32 %v580_v32  ;;  %v532_v54 = vsub.f32 %v1958_v56, %v481_v46 }
 0x1c6   :  { %v2135_v58 = vpop.eup %1472  ;;  %658 = vadd.xlane.f32.xlu1 %v2129_v33  ;;  %1486 = vpow2.f32 %v602_v2  ;;  %v582_v8 = vmul.f32 1.442695, %v535_v47 }
 0x1c7   :  { %v576_v36 = vmul.f32 1.442695, %v532_v54  ;;  %v483_v1 = vpop.xlane.xlu1 %482  ;;  %668 = vadd.xlane.f32.xlu0 %v2135_v58  ;;  %1371 = vmatpush3.bf16.msra.mxu0 %v921_v7  ;;  %v2149_v38 = vpop.eup %1474 }
 0x1c8   :  { %v533_v56 = vsub.f32 %v1967_v0, %v483_v1  ;;  %v513_v11 = vpop.xlane.xlu0 %512  ;;  %1372 = vmatprep.subr.bf16.mxu0 %v920_v17 }
 0x1c9   :  { %1488 = vpow2.f32 %v576_v36  ;;  %v548_v0 = vsub.f32 %v1964_v63, %v513_v11 }
 0x1ca   :  { %v2155_v20 = vpop.eup %1476  ;;  %638 = vadd.xlane.f32.xlu1 %v2149_v38  ;;  %1490 = vpow2.f32 %v582_v8  ;;  %v578_v24 = vmul.f32 1.442695, %v533_v56 }
 0x1cb   :  { %v608_v42 = vmul.f32 1.442695, %v548_v0  ;;  %v515_v25 = vpop.xlane.xlu1 %514  ;;  %632 = vadd.xlane.f32.xlu0 %v2155_v20  ;;  %1373 = vmatpush3.bf16.msra.mxu0 %v920_v17  ;;  %v2163_v29 = vpop.eup %1478  ;;  %v778_v17 = vld [vmem:[%s2487_s4 + $0x10] sm:$0xff] }
 0x1cc   :  { %v549_v63 = vsub.f32 %v1971_v3, %v515_v25  ;;  %v517_v28 = vpop.xlane.xlu0 %516  ;;  %v928_v3 = vpack.c.bf16 %v905_v44, %v904_v31  ;;  %vm810_vm3 = vcmp.ge.u32.totalorder %v778_v17, 0  ;;  %v794_v44 = vld [vmem:[%s2487_s4 + $0x90] sm:$0xff] }
 0x1cd   :  { %1492 = vpow2.f32 %v608_v42  ;;  %v550_v50 = vsub.f32 %v1973_v5, %v517_v28  ;;  %vm1185_vm7 = vmpackc.low %vm811_vm4, %vm810_vm3  ;;  %vm826_vm9 = vcmp.ge.u32.totalorder %v794_v44, 0 }
 0x1ce   :  { %v2169_v35 = vpop.eup %1480  ;;  %670 = vadd.xlane.f32.xlu1 %v2163_v29  ;;  %1494 = vpow2.f32 %v578_v24  ;;  %v610_v39 = vmul.f32 1.442695, %v549_v63  ;;  %1404 = vmatprep.subr.bf16.mxu1 %v928_v3  ;;  %v792_v63 = vld [vmem:[%s2487_s4 + $0x80] sm:$0xff] }
 0x1cf   :  { %v612_v57 = vmul.f32 1.442695, %v550_v50  ;;  %v519_v37 = vpop.xlane.xlu1 %518  ;;  %664 = vadd.xlane.f32.xlu0 %v2169_v35  ;;  %v2174_v5 = vpop.eup %1482  ;;  %1405 = vmatpush3.bf16.msra.mxu1 %v928_v3  ;;  %v793_v50 = vld [vmem:[%s2487_s4 + $0x88] sm:$0xff]  ;;  %vm824_vm6 = vcmp.ge.u32.totalorder %v792_v63, 0  ;;  %v798_v63 = vld [vmem:[%s2487_s4 + $0xb0] sm:$0xff] }
 0x1d0   :  { %v551_v49 = vsub.f32 %v1977_v6, %v519_v37  ;;  %vm825_vm8 = vcmp.ge.u32.totalorder %v793_v50, 0 }
 0x1d1   :  { %1496 = vpow2.f32 %v612_v57  ;;  %vm1206_vm11 = vmpackc.low %vm825_vm8, %vm824_vm6  ;;  %vm830_vm6 = vcmp.ge.u32.totalorder %v798_v63, 0 }
 0x1d2   :  { %v2176_v27 = vpop.eup %1484  ;;  %634 = vadd.xlane.f32.xlu1 %v2174_v5  ;;  %1498 = vpow2.f32 %v610_v39  ;;  %v614_v55 = vmul.f32 1.442695, %v551_v49 }
 0x1d3   :  { %644 = vadd.xlane.f32.xlu0 %v2176_v27  ;;  %v2180_v62 = vpop.eup %1486 }
 0x1d4   :  { %1500 = vpow2.f32 %v614_v55 }
 0x1d6   :  { %v2182_v32 = vpop.eup %1488  ;;  %666 = vadd.xlane.f32.xlu1 %v2180_v62 }
 0x1d7   :  { %640 = vadd.xlane.f32.xlu0 %v2182_v32  ;;  %v2186_v6 = vpop.eup %1490 }
 0x1da   :  { %v2188_v45 = vpop.eup %1492  ;;  %646 = vadd.xlane.f32.xlu1 %v2186_v6 }
 0x1db   :  { %672 = vadd.xlane.f32.xlu0 %v2188_v45  ;;  %v2192_v2 = vpop.eup %1494 }
 0x1de   :  { %v2194_v47 = vpop.eup %1496  ;;  %642 = vadd.xlane.f32.xlu1 %v2192_v2 }
 0x1df   :  { %676 = vadd.xlane.f32.xlu0 %v2194_v47  ;;  %v2198_v46 = vpop.eup %1498 }
 0x1e1   :  { %v2201_v48 = vpop.eup %1500 }
 0x1e2   :  { %674 = vadd.xlane.f32.xlu1 %v2198_v46 }
 0x1e6   :  { %678 = vadd.xlane.f32.xlu1 %v2201_v48 }
 0x22c   :  { %v621_v9 = vpop.xlane.xlu0 %620 }
 0x230   :  { %v653_v52 = vpop.xlane.xlu0 %652 }
 0x233   :  { %v623_v54 = vpop.xlane.xlu1 %622 }
 0x234   :  { %v617_v7 = vpop.xlane.xlu0 %616  ;;  %1502 = vrcp.f32 %v623_v54 }
 0x235   :  { %1504 = vrcp.f32 %v617_v7 }
 0x236   :  { %1506 = vrcp.f32 %v621_v9 }
 0x237   :  { %v655_v53 = vpop.xlane.xlu1 %654 }
 0x238   :  { %v649_v12 = vpop.xlane.xlu0 %648 }
 0x23b   :  { %v619_v36 = vpop.xlane.xlu1 %618 }
 0x23c   :  { %1508 = vrcp.f32 %v619_v36  ;;  %v629_v1 = vpop.xlane.xlu0 %628 }
 0x23d   :  { %1510 = vrcp.f32 %v655_v53 }
 0x23e   :  { %1512 = vrcp.f32 %v649_v12 }
 0x23f   :  { %1514 = vrcp.f32 %v653_v52  ;;  %v651_v8 = vpop.xlane.xlu1 %650 }
 0x240   :  { %1516 = vrcp.f32 %v651_v8  ;;  %v661_v56 = vpop.xlane.xlu0 %660 }
 0x241   :  { %v1503_v0 = vpop.eup %1502 }
 0x242   :  { %v1505_v21 = vpop.eup %1504  ;;  %v747_v31 = vmul.f32 %v1503_v0, %v1998_v59  ;;  %v795_v59 = vld [vmem:[%s2487_s4 + $0x98] sm:$0xff] }
 0x243   :  { %v631_v11 = vpop.xlane.xlu1 %630  ;;  %v1507_v25 = vpop.eup %1506  ;;  %v744_v57 = vmul.f32 %v1505_v21, %v2001_v60  ;;  %vm827_vm10 = vcmp.ge.u32.totalorder %v795_v59, 0  ;;  %v796_v21 = vld [vmem:[%s2487_s4 + $0xa0] sm:$0xff] }
 0x244   :  { %v625_v16 = vpop.xlane.xlu0 %624  ;;  %1518 = vrcp.f32 %v631_v11  ;;  %v746_v49 = vmul.f32 %v1507_v25, %v1989_v41  ;;  %vm1209_vm12 = vmpackc.low %vm827_vm10, %vm826_vm9  ;;  %vm828_vm3 = vcmp.ge.u32.totalorder %v796_v21, 0 }
 0x245   :  { %1520 = vrcp.f32 %v625_v16  ;;  %v782_v16 = vld [vmem:[%s2487_s4 + $0x30] sm:$0xff] }
 0x246   :  { %1522 = vrcp.f32 %v629_v1  ;;  %vm814_vm15 = vcmp.ge.u32.totalorder %v782_v16, 0 }
 0x247   :  { %v663_v42 = vpop.xlane.xlu1 %662  ;;  %vm1191_vm4 = vmpackc.low %vm815_vm1, %vm814_vm15 }
 0x248   :  { %v657_v24 = vpop.xlane.xlu0 %656 }
 0x249   :  { %v1509_v28 = vpop.eup %1508 }
 0x24a   :  { %v1511_v3 = vpop.eup %1510  ;;  %v745_v37 = vmul.f32 %v1509_v28, %v2029_v30  ;;  %v1186_v30 = vpack.c.bf16 %v747_v31, %v746_v49 }
 0x24b   :  { %v1513_v39 = vpop.eup %1512  ;;  %v627_v55 = vpop.xlane.xlu1 %626  ;;  %v763_v7 = vmul.f32 %v1511_v3, %v2012_v14 }
 0x24c   :  { %v1515_v9 = vpop.eup %1514  ;;  %1524 = vrcp.f32 %v627_v55  ;;  %v637_v52 = vpop.xlane.xlu0 %636  ;;  %v1183_v54 = vpack.c.bf16 %v745_v37, %v744_v57  ;;  %v760_v41 = vmul.f32 %v1513_v39, %v2015_v19 }
 0x24d   :  { %v1517_v60 = vpop.eup %1516  ;;  %1526 = vrcp.f32 %v663_v42  ;;  %v762_v12 = vmul.f32 %v1515_v9, %v1994_v51  ;;  %v780_v51 = vld [vmem:[%s2487_s4 + $0x20] sm:$0xff] }
 0x24e   :  { %1528 = vrcp.f32 %v657_v24  ;;  %1374 = vmatprep.mubr.msk.bf16.mxu0 %vm1182_vm5, %v1183_v54  ;;  %v761_v53 = vmul.f32 %v1517_v60, %v2049_v43  ;;  %v781_v43 = vld [vmem:[%s2487_s4 + $0x28] sm:$0xff]  ;;  %vm812_vm13 = vcmp.ge.u32.totalorder %v780_v51, 0 }
 0x24f   :  { %1530 = vrcp.f32 %v661_v56  ;;  %1375 = vmatmul.mubr.msk.bf16.vlgmr.msra.gmra.mxu0 %vm1185_vm7, %v1186_v30  ;;  %v659_v36 = vpop.xlane.xlu1 %658  ;;  %v1210_v14 = vpack.c.bf16 %v763_v7, %v762_v12  ;;  %vm813_vm14 = vcmp.ge.u32.totalorder %v781_v43, 0  ;;  %v797_v24 = vld [vmem:[%s2487_s4 + $0xa8] sm:$0xff]  ;;  %v787_v12 = vld [vmem:[%s2487_s4 + $0x58] sm:$0xff] }
 0x250   :  { %1532 = vrcp.f32 %v659_v36  ;;  %v669_v1 = vpop.xlane.xlu0 %668  ;;  %v1207_v8 = vpack.c.bf16 %v761_v53, %v760_v41  ;;  %vm2272_vm2 = vmpackc.low %vm813_vm14, %vm812_vm13  ;;  %vm829_vm5 = vcmp.ge.u32.totalorder %v797_v24, 0  ;;  %v785_v41 = vld [vmem:[%s2487_s4 + $0x48] sm:$0xff]  ;;  %v786_v53 = vld [vmem:[%s2487_s4 + $0x50] sm:$0xff]  ;;  %vm819_vm13 = vcmp.ge.u32.totalorder %v787_v12, 0 }
 0x251   :  { %v1519_v56 = vpop.eup %1518  ;;  %vm1212_vm8 = vmpackc.low %vm829_vm5, %vm828_vm3  ;;  %v801_v51 = vld [vmem:[%s2487_s4 + $0xc8] sm:$0xff] }
 0x252   :  { %1406 = vmatprep.mubr.msk.bf16.mxu1 %vm1206_vm11, %v1207_v8  ;;  %v1521_v15 = vpop.eup %1520  ;;  %v751_v25 = vmul.f32 %v1519_v56, %v2069_v13  ;;  %v799_v13 = vld [vmem:[%s2487_s4 + $0xb8] sm:$0xff]  ;;  %vm817_vm11 = vcmp.ge.u32.totalorder %v785_v41, 0 }
 0x253   :  { %1407 = vmatmul.mubr.msk.bf16.vlgmr.msra.gmra.mxu1 %vm1209_vm12, %v1210_v14  ;;  %v639_v11 = vpop.xlane.xlu1 %638  ;;  %v1523_v17 = vpop.eup %1522  ;;  %v748_v31 = vmul.f32 %v1521_v15, %v2075_v10  ;;  %vm831_vm7 = vcmp.ge.u32.totalorder %v799_v13, 0  ;;  %vm818_vm12 = vcmp.ge.u32.totalorder %v786_v53, 0  ;;  %v789_v13 = vld [vmem:[%s2487_s4 + $0x68] sm:$0xff] }
 0x254   :  { %v633_v19 = vpop.xlane.xlu0 %632  ;;  %1534 = vrcp.f32 %v639_v11  ;;  %v750_v37 = vmul.f32 %v1523_v17, %v2035_v34  ;;  %vm1215_vm9 = vmpackc.low %vm831_vm7, %vm830_vm6 }
 0x255   :  { %1536 = vrcp.f32 %v633_v19  ;;  %v800_v19 = vld [vmem:[%s2487_s4 + $0xc0] sm:$0xff]  ;;  %vm1197_vm15 = vmpackc.low %vm819_vm13, %vm818_vm12 }
 0x256   :  { %1538 = vrcp.f32 %v637_v52  ;;  %v1192_v49 = vpack.c.bf16 %v751_v25, %v750_v37  ;;  %vm832_vm1 = vcmp.ge.u32.totalorder %v800_v19, 0 }
 0x257   :  { %v671_v0 = vpop.xlane.xlu1 %670 }
 0x258   :  { %v665_v22 = vpop.xlane.xlu0 %664 }
 0x259   :  { %v1525_v42 = vpop.eup %1524 }
 0x25a   :  { %v1527_v28 = vpop.eup %1526  ;;  %v749_v50 = vmul.f32 %v1525_v42, %v2109_v61 }
 0x25b   :  { %v1529_v44 = vpop.eup %1528  ;;  %v635_v3 = vpop.xlane.xlu1 %634  ;;  %v767_v55 = vmul.f32 %v1527_v28, %v2089_v23 }
 0x25c   :  { %v1531_v59 = vpop.eup %1530  ;;  %1540 = vrcp.f32 %v635_v3  ;;  %v645_v10 = vpop.xlane.xlu0 %644  ;;  %v1189_v61 = vpack.c.bf16 %v749_v50, %v748_v31  ;;  %v764_v34 = vmul.f32 %v1529_v44, %v2095_v26 }
 0x25d   :  { %v1533_v39 = vpop.eup %1532  ;;  %1542 = vrcp.f32 %v671_v0  ;;  %v766_v54 = vmul.f32 %v1531_v59, %v2055_v4  ;;  %v804_v59 = vld [vmem:[%s2487_s4 + $0xe0] sm:$0xff] }
 0x25e   :  { %1544 = vrcp.f32 %v665_v22  ;;  %1378 = vmatprep.mubr.msk.bf16.mxu0 %vm2272_vm2, %v1189_v61  ;;  %v765_v9 = vmul.f32 %v1533_v39, %v2129_v33  ;;  %v784_v33 = vld [vmem:[%s2487_s4 + $0x40] sm:$0xff]  ;;  %vm833_vm2 = vcmp.ge.u32.totalorder %v801_v51, 0  ;;  %vm836_vm13 = vcmp.ge.u32.totalorder %v804_v59, 0 }
 0x25f   :  { %1546 = vrcp.f32 %v669_v1  ;;  %1379 = vmatmul.mubr.msk.bf16.gmra.mxu0 %vm1191_vm4, %v1192_v49  ;;  %v667_v52 = vpop.xlane.xlu1 %666  ;;  %v1216_v23 = vpack.c.bf16 %v767_v55, %v766_v54  ;;  %vm816_vm10 = vcmp.ge.u32.totalorder %v784_v33, 0  ;;  %vm835_vm4 = vcmp.ge.u32.totalorder %v803_v18, 0  ;;  %vm1218_vm5 = vmpackc.low %vm833_vm2, %vm832_vm1 }
 0x260   :  { %1548 = vrcp.f32 %v667_v52  ;;  %v641_v60 = vpop.xlane.xlu0 %640  ;;  %v1213_v30 = vpack.c.bf16 %v765_v9, %v764_v34  ;;  %vm1194_vm14 = vmpackc.low %vm817_vm11, %vm816_vm10  ;;  %v806_v52 = vld [vmem:[%s2487_s4 + $0xf0] sm:$0xff] }
 0x261   :  { %v1535_v4 = vpop.eup %1534  ;;  %vm838_vm1 = vcmp.ge.u32.totalorder %v806_v52, 0 }
 0x262   :  { %1410 = vmatprep.mubr.msk.bf16.mxu1 %vm1212_vm8, %v1213_v30  ;;  %v1537_v36 = vpop.eup %1536  ;;  %v755_v11 = vmul.f32 %v1535_v4, %v2149_v38  ;;  %v802_v38 = vld [vmem:[%s2487_s4 + $0xd0] sm:$0xff]  ;;  %vm821_vm8 = vcmp.ge.u32.totalorder %v789_v13, 0 }
 0x263   :  { %1411 = vmatmul.mubr.msk.bf16.gmra.mxu1 %vm1215_vm9, %v1216_v23  ;;  %v647_v7 = vpop.xlane.xlu1 %646  ;;  %v1539_v8 = vpop.eup %1538  ;;  %v752_v56 = vmul.f32 %v1537_v36, %v2155_v20  ;;  %vm834_vm3 = vcmp.ge.u32.totalorder %v802_v38, 0 }
 0x264   :  { %1550 = vrcp.f32 %v647_v7  ;;  %v673_v26 = vpop.xlane.xlu0 %672  ;;  %v754_v22 = vmul.f32 %v1539_v8, %v2115_v40  ;;  %vm1221_vm6 = vmpackc.low %vm835_vm4, %vm834_vm3 }
 0x265   :  { %1552 = vrcp.f32 %v641_v60 }
 0x266   :  { %1554 = vrcp.f32 %v645_v10  ;;  %v1198_v42 = vpack.c.bf16 %v755_v11, %v754_v22  ;;  %v805_v10 = vld [vmem:[%s2487_s4 + $0xe8] sm:$0xff] }
 0x267   :  { %v643_v1 = vpop.xlane.xlu1 %642 }
 0x268   :  { %1556 = vrcp.f32 %v643_v1  ;;  %v677_v0 = vpop.xlane.xlu0 %676 }
 0x269   :  { %v1541_v14 = vpop.eup %1540  ;;  %1558 = vrcp.f32 %v673_v26 }
 0x26a   :  { %v1543_v43 = vpop.eup %1542  ;;  %v753_v16 = vmul.f32 %v1541_v14, %v2174_v5 }
 0x26b   :  { %v1545_v15 = vpop.eup %1544  ;;  %v675_v17 = vpop.xlane.xlu1 %674  ;;  %v771_v25 = vmul.f32 %v1543_v43, %v2163_v29  ;;  %v788_v29 = vld [vmem:[%s2487_s4 + $0x60] sm:$0xff] }
 0x26c   :  { %v1547_v21 = vpop.eup %1546  ;;  %1560 = vrcp.f32 %v675_v17  ;;  %v1195_v20 = vpack.c.bf16 %v753_v16, %v752_v56  ;;  %v768_v24 = vmul.f32 %v1545_v15, %v2169_v35  ;;  %vm820_vm7 = vcmp.ge.u32.totalorder %v788_v29, 0 }
 0x26d   :  { %v1549_v5 = vpop.eup %1548  ;;  %1562 = vrcp.f32 %v677_v0  ;;  %v770_v28 = vmul.f32 %v1547_v21, %v2135_v58  ;;  %v791_v58 = vld [vmem:[%s2487_s4 + $0x78] sm:$0xff]  ;;  %vm1200_vm11 = vmpackc.low %vm821_vm8, %vm820_vm7 }
 0x26e   :  { %1382 = vmatprep.mubr.msk.bf16.mxu0 %vm1194_vm14, %v1195_v20  ;;  %v769_v40 = vmul.f32 %v1549_v5, %v2180_v62  ;;  %v790_v62 = vld [vmem:[%s2487_s4 + $0x70] sm:$0xff]  ;;  %vm823_vm10 = vcmp.ge.u32.totalorder %v791_v58, 0  ;;  %vm837_vm14 = vcmp.ge.u32.totalorder %v805_v10, 0 }
 0x26f   :  { %1383 = vmatmul.mubr.msk.bf16.gmra.mxu0 %vm1197_vm15, %v1198_v42  ;;  %v679_v63 = vpop.xlane.xlu1 %678  ;;  %v1222_v50 = vpack.c.bf16 %v771_v25, %v770_v28  ;;  %vm822_vm9 = vcmp.ge.u32.totalorder %v790_v62, 0  ;;  %vm1224_vm15 = vmpackc.low %vm837_vm14, %vm836_vm13 }
 0x270   :  { %1564 = vrcp.f32 %v679_v63  ;;  %v1219_v31 = vpack.c.bf16 %v769_v40, %v768_v24  ;;  %vm1203_vm12 = vmpackc.low %vm823_vm10, %vm822_vm9 }
 0x271   :  { %v1551_v35 = vpop.eup %1550 }
 0x272   :  { %1414 = vmatprep.mubr.msk.bf16.mxu1 %vm1218_vm5, %v1219_v31  ;;  %v1553_v44 = vpop.eup %1552  ;;  %v759_v37 = vmul.f32 %v1551_v35, %v2186_v6 }
 0x273   :  { %1415 = vmatmul.mubr.msk.bf16.gmra.mxu1 %vm1221_vm6, %v1222_v50  ;;  %v1555_v3 = vpop.eup %1554  ;;  %v756_v61 = vmul.f32 %v1553_v44, %v2182_v32  ;;  %v807_v32 = vld [vmem:[%s2487_s4 + $0xf8] sm:$0xff] }
 0x274   :  { %v758_v55 = vmul.f32 %v1555_v3, %v2176_v27  ;;  %vm839_vm2 = vcmp.ge.u32.totalorder %v807_v32, 0 }
 0x275   :  { %v1557_v57 = vpop.eup %1556  ;;  %vm1227_vm3 = vmpackc.low %vm839_vm2, %vm838_vm1 }
 0x276   :  { %v757_v39 = vmul.f32 %v1557_v57, %v2192_v2  ;;  %v1559_v49 = vpop.eup %1558  ;;  %v1204_v9 = vpack.c.bf16 %v759_v37, %v758_v55 }
 0x277   :  { %v772_v2 = vmul.f32 %v1559_v49, %v2188_v45 }
 0x278   :  { %v1201_v34 = vpack.c.bf16 %v757_v39, %v756_v61 }
 0x279   :  { %v1561_v6 = vpop.eup %1560 }
 0x27a   :  { %1386 = vmatprep.mubr.msk.bf16.mxu0 %vm1200_vm11, %v1201_v34  ;;  %v773_v54 = vmul.f32 %v1561_v6, %v2198_v46  ;;  %v1563_v27 = vpop.eup %1562 }
 0x27b   :  { %1387 = vmatmul.mubr.msk.bf16.gmra.mxu0 %vm1203_vm12, %v1204_v9  ;;  %v774_v23 = vmul.f32 %v1563_v27, %v2194_v47 }
 0x27c   :  { %v1225_v60 = vpack.c.bf16 %v773_v54, %v772_v2 }
 0x27d   :  { %v1565_v30 = vpop.eup %1564 }
 0x27e   :  { %1418 = vmatprep.mubr.msk.bf16.mxu1 %vm1224_vm15, %v1225_v60  ;;  %v775_v7 = vmul.f32 %v1565_v30, %v2201_v48 }
 0x280   :  { %v1228_v26 = vpack.c.bf16 %v775_v7, %v774_v23 }
 0x282   :  { %1419 = vmatmul.mubr.msk.bf16.gmra.mxu1 %vm1227_vm3, %v1228_v26 }
 0x30f   :  { %v1376_v33 = vpop.f32.mrf.mxu0 }
 0x310   :  { %1132 = vst.msk [vmem:[%s2488_s5 + $0x10] sm:$0xff] %vm117_vm0, %v1376_v33 }
 0x311   :  { %v970_v45 = vpop.f32.mrf.mxu0 }
 0x312   :  { %1130 = vst.msk [vmem:[%s2488_s5] sm:$0xff] %vm117_vm0, %v970_v45 }
 0x313   :  { %v1377_v46 = vpop.f32.mrf.mxu0  ;;  %v1408_v41 = vpop.f32.mrf.mxu1 }
 0x314   :  { %1133 = vst.msk [vmem:[%s2488_s5 + $0x18] sm:$0xff] %vm117_vm0, %v1377_v46  ;;  %1148 = vst.msk [vmem:[%s2488_s5 + $0x90] sm:$0xff] %vm117_vm0, %v1408_v41 }
 0x315   :  { %v973_v47 = vpop.f32.mrf.mxu0  ;;  %v1067_v48 = vpop.f32.mrf.mxu1 }
 0x316   :  { %1131 = vst.msk [vmem:[%s2488_s5 + $0x8] sm:$0xff] %vm117_vm0, %v973_v47  ;;  %1146 = vst.msk [vmem:[%s2488_s5 + $0x80] sm:$0xff] %vm117_vm0, %v1067_v48 }
 0x317   :  { %v1409_v4 = vpop.f32.mrf.mxu1 }
 0x318   :  { %1149 = vst.msk [vmem:[%s2488_s5 + $0x98] sm:$0xff] %vm117_vm0, %v1409_v4 }
 0x319   :  { %v1070_v53 = vpop.f32.mrf.mxu1 }
 0x31a   :  { %1147 = vst.msk [vmem:[%s2488_s5 + $0x88] sm:$0xff] %vm117_vm0, %v1070_v53 }
 0x31f   :  { %v1380_v12 = vpop.f32.mrf.mxu0 }
 0x320   :  { %1136 = vst.msk [vmem:[%s2488_s5 + $0x30] sm:$0xff] %vm117_vm0, %v1380_v12 }
 0x321   :  { %v986_v36 = vpop.f32.mrf.mxu0 }
 0x322   :  { %1134 = vst.msk [vmem:[%s2488_s5 + $0x20] sm:$0xff] %vm117_vm0, %v986_v36 }
 0x323   :  { %v1381_v1 = vpop.f32.mrf.mxu0  ;;  %v1412_v8 = vpop.f32.mrf.mxu1 }
 0x324   :  { %1137 = vst.msk [vmem:[%s2488_s5 + $0x38] sm:$0xff] %vm117_vm0, %v1381_v1  ;;  %1152 = vst.msk [vmem:[%s2488_s5 + $0xb0] sm:$0xff] %vm117_vm0, %v1412_v8 }
 0x325   :  { %v989_v14 = vpop.f32.mrf.mxu0  ;;  %v1083_v11 = vpop.f32.mrf.mxu1 }
 0x326   :  { %1135 = vst.msk [vmem:[%s2488_s5 + $0x28] sm:$0xff] %vm117_vm0, %v989_v14  ;;  %1150 = vst.msk [vmem:[%s2488_s5 + $0xa0] sm:$0xff] %vm117_vm0, %v1083_v11 }
 0x327   :  { %v1413_v19 = vpop.f32.mrf.mxu1 }
 0x328   :  { %1153 = vst.msk [vmem:[%s2488_s5 + $0xb8] sm:$0xff] %vm117_vm0, %v1413_v19 }
 0x329   :  { %v1086_v51 = vpop.f32.mrf.mxu1 }
 0x32a   :  { %1151 = vst.msk [vmem:[%s2488_s5 + $0xa8] sm:$0xff] %vm117_vm0, %v1086_v51 }
 0x32f   :  { %v1384_v43 = vpop.f32.mrf.mxu0 }
 0x330   :  { %1140 = vst.msk [vmem:[%s2488_s5 + $0x50] sm:$0xff] %vm117_vm0, %v1384_v43 }
 0x331   :  { %v1002_v56 = vpop.f32.mrf.mxu0 }
 0x332   :  { %1138 = vst.msk [vmem:[%s2488_s5 + $0x40] sm:$0xff] %vm117_vm0, %v1002_v56 }
 0x333   :  { %v1385_v16 = vpop.f32.mrf.mxu0  ;;  %v1416_v38 = vpop.f32.mrf.mxu1 }
 0x334   :  { %1141 = vst.msk [vmem:[%s2488_s5 + $0x58] sm:$0xff] %vm117_vm0, %v1385_v16  ;;  %1156 = vst.msk [vmem:[%s2488_s5 + $0xd0] sm:$0xff] %vm117_vm0, %v1416_v38 }
 0x335   :  { %v1005_v18 = vpop.f32.mrf.mxu0  ;;  %v1099_v15 = vpop.f32.mrf.mxu1 }
 0x336   :  { %1139 = vst.msk [vmem:[%s2488_s5 + $0x48] sm:$0xff] %vm117_vm0, %v1005_v18  ;;  %1154 = vst.msk [vmem:[%s2488_s5 + $0xc0] sm:$0xff] %vm117_vm0, %v1099_v15 }
 0x337   :  { %v1417_v0 = vpop.f32.mrf.mxu1 }
 0x338   :  { %1157 = vst.msk [vmem:[%s2488_s5 + $0xd8] sm:$0xff] %vm117_vm0, %v1417_v0 }
 0x339   :  { %v1102_v17 = vpop.f32.mrf.mxu1 }
 0x33a   :  { %1155 = vst.msk [vmem:[%s2488_s5 + $0xc8] sm:$0xff] %vm117_vm0, %v1102_v17 }
 0x33b   :  { %v1388_v22 = vpop.f32.mrf.mxu0 }
 0x33c   :  { %1144 = vst.msk [vmem:[%s2488_s5 + $0x70] sm:$0xff] %vm117_vm0, %v1388_v22 }
 0x33d   :  { %v1018_v21 = vpop.f32.mrf.mxu0 }
 0x33e   :  { %1142 = vst.msk [vmem:[%s2488_s5 + $0x60] sm:$0xff] %vm117_vm0, %v1018_v21 }
 0x33f   :  { %v1389_v20 = vpop.f32.mrf.mxu0 }
 0x340   :  { %1145 = vst.msk [vmem:[%s2488_s5 + $0x78] sm:$0xff] %vm117_vm0, %v1389_v20 }
 0x341   :  { %v1021_v5 = vpop.f32.mrf.mxu0 }
 0x342   :  { %1143 = vst.msk [vmem:[%s2488_s5 + $0x68] sm:$0xff] %vm117_vm0, %v1021_v5  ;;  %v1420_v42 = vpop.f32.mrf.mxu1 }
 0x343   :  { %1160 = vst.msk [vmem:[%s2488_s5 + $0xf0] sm:$0xff] %vm117_vm0, %v1420_v42 }
 0x344   :  { %v1115_v25 = vpop.f32.mrf.mxu1 }
 0x345   :  { %1158 = vst.msk [vmem:[%s2488_s5 + $0xe0] sm:$0xff] %vm117_vm0, %v1115_v25 }
 0x346   :  { %v1421_v24 = vpop.f32.mrf.mxu1 }
 0x347   :  { %1161 = vst.msk [vmem:[%s2488_s5 + $0xf8] sm:$0xff] %vm117_vm0, %v1421_v24 }
 0x348   :  { %v1118_v40 = vpop.f32.mrf.mxu1 }
 0x349   :  { %1159 = vst.msk [vmem:[%s2488_s5 + $0xe8] sm:$0xff] %vm117_vm0, %v1118_v40 }

</bundles_post_ra>
